<compile_context>
chip_gen: v7x
topology: tpu7x:2x2x1
jax: 0.10.0
libtpu: 0.0.40
codegen_flags: <defaults>
</compile_context>

<pallas_src>
import functools

import jax
import jax.numpy as jnp
from jax.experimental import pallas as pl
from jax.experimental.pallas import tpu as pltpu


def _round_up(x, m):
    return ((x + m - 1) // m) * m


def _choose_tile(batch_padded, max_tile=256):
    """Largest multiple-of-8 tile <= max_tile that divides batch_padded."""
    if batch_padded <= max_tile:
        return batch_padded
    best = 8
    for t in range(8, max_tile + 1, 8):
        if batch_padded % t == 0:
            best = t
    return best


def dueling_dqn_kernel(
    x_ref,
    w1_ref, b1_ref, w2_ref, b2_ref, w3_ref, b3_ref,   # q_net trunk
    ws1_ref, bs1_ref,                                  # fused adv|value first layer
    ws2_ref, bs2_ref,                                  # fused dueling-combine layer
    out_ref,
):
    def linear(h, w_ref, b_ref):
        return jnp.dot(h, w_ref[...], preferred_element_type=jnp.float32) + b_ref[...]

    x = x_ref[...]

    # q_net: Linear -> ReLU -> Linear -> ReLU -> Linear (no final ReLU).
    h = jnp.maximum(linear(x, w1_ref, b1_ref), 0.0)
    h = jnp.maximum(linear(h, w2_ref, b2_ref), 0.0)
    h = linear(h, w3_ref, b3_ref)

    # GradScaler(1/sqrt(2)) is identity on the forward pass.

    # Fused streams:
    #   s = relu(h @ [wa1 | wv1] + [ba1 | bv1])                  -> (TILE_B, 2*fc)
    #   q = s @ W2_fused + b2_fused                              -> (TILE_B, 128)
    # where W2_fused already encodes  adv - mean(adv) + value  (see fuse_params),
    # lanes [0, n_actions) hold q-values, padded lanes are exact zeros.
    s = jnp.maximum(linear(h, ws1_ref, bs1_ref), 0.0)
    out_ref[...] = linear(s, ws2_ref, bs2_ref)


def init_linear(key, in_features, out_features):
    """PyTorch nn.Linear default init (uniform +/- 1/sqrt(fan_in)).

    Returns weight already transposed to (in, out) plus bias as (1, out).
    """
    kw, kb = jax.random.split(key)
    bound = 1.0 / (in_features ** 0.5)
    w = jax.random.uniform(
        kw, (in_features, out_features), jnp.float32, -bound, bound)
    b = jax.random.uniform(kb, (1, out_features), jnp.float32, -bound, bound)
    return w, b


def make_params(key, observation_size, fc_dims, n_actions):
    keys = jax.random.split(key, 7)
    w1, b1 = init_linear(keys[0], observation_size, fc_dims)
    w2, b2 = init_linear(keys[1], fc_dims, fc_dims)
    w3, b3 = init_linear(keys[2], fc_dims, fc_dims)
    wa1, ba1 = init_linear(keys[3], fc_dims, fc_dims)
    wa2, ba2 = init_linear(keys[4], fc_dims, n_actions)
    wv1, bv1 = init_linear(keys[5], fc_dims, fc_dims)
    wv2, bv2 = init_linear(keys[6], fc_dims, 1)
    return (w1, b1, w2, b2, w3, b3, wa1, ba1, wa2, ba2, wv1, bv1, wv2, bv2)


def fuse_params(params, n_actions):
    """One-time preprocessing.

    Fuses the adv/value first layers column-wise, and folds the whole dueling
    combination  q = adv + value - mean(adv)  into the second-layer weights:
        q[:, j] = s_a @ (wa2[:, j] - mean_cols(wa2)) + s_v @ wv2
                  + (ba2[j] - mean(ba2) + bv2)
    The output is zero-padded to a 128-lane-dense slab (zero weights + zero
    bias on padded lanes -> exact-zero padded outputs, unmasked stores).
    """
    (w1, b1, w2, b2, w3, b3, wa1, ba1, wa2, ba2, wv1, bv1, wv2, bv2) = params
    fc = w2.shape[0]
    stream_pad = _round_up(n_actions, 128)

    # First stream layer: column-wise concat -> one (fc, 2*fc) matmul.
    ws1 = jnp.concatenate([wa1, wv1], axis=1)
    bs1 = jnp.concatenate([ba1, bv1], axis=1)

    # Second stream layer: dueling combination folded into the weights.
    wa2_centered = wa2 - jnp.mean(wa2, axis=1, keepdims=True)      # (fc, n_actions)
    ws2 = jnp.zeros((2 * fc, stream_pad), jnp.float32)
    ws2 = ws2.at[:fc, :n_actions].set(wa2_centered)
    ws2 = ws2.at[fc:, :n_actions].set(jnp.broadcast_to(wv2, (fc, n_actions)))
    bs2 = jnp.zeros((1, stream_pad), jnp.float32)
    bs2 = bs2.at[:, :n_actions].set(ba2 - jnp.mean(ba2) + bv2[0, 0])

    return (w1, b1, w2, b2, w3, b3, ws1, bs1, ws2, bs2)


@functools.partial(jax.jit, static_argnames=("n_actions",))
def dueling_dqn_forward(observation, fused_params, *, n_actions):
    batch, obs_dim = observation.shape
    stream_pad = fused_params[-1].shape[1]
    fc = fused_params[2].shape[0]

    # Batch tiling: pad rows to a multiple of 8 (f32 sublane), then pick the
    # largest <=256-row tile that divides the padded batch (minimal padding).
    b_pad = _round_up(batch, 8)
    tile_b = _choose_tile(b_pad, max_tile=256)
    if b_pad != batch:
        observation = jnp.pad(observation, ((0, b_pad - batch), (0, 0)))
    grid = (b_pad // tile_b,)

    # Tiled observation / output; weights + biases stay VMEM-resident across
    # the whole grid (index_map -> (0, 0)).
    x_spec = pl.BlockSpec((tile_b, obs_dim), lambda i: (i, 0))
    param_specs = [
        pl.BlockSpec(tuple(p.shape), lambda i: (0, 0)) for p in fused_params
    ]
    out_spec = pl.BlockSpec((tile_b, stream_pad), lambda i: (i, 0))

    param_bytes = sum(int(p.size) * 4 for p in fused_params)
    flops = 2 * b_pad * (
        obs_dim * fc + fc * fc + fc * fc + fc * (2 * fc) + (2 * fc) * stream_pad)
    cost = pl.CostEstimate(
        flops=flops,
        transcendentals=0,
        bytes_accessed=4 * b_pad * (obs_dim + stream_pad) + param_bytes,
    )

    out_padded = pl.pallas_call(
        dueling_dqn_kernel,
        out_shape=jax.ShapeDtypeStruct((b_pad, stream_pad), jnp.float32),
        grid=grid,
        in_specs=[x_spec] + param_specs,
        out_specs=out_spec,
        compiler_params=pltpu.CompilerParams(
            dimension_semantics=("parallel",)),
        cost_estimate=cost,
    )(observation, *fused_params)

    # Slice off the lane / batch padding (layout plumbing, not compute).
    return out_padded[:batch, :n_actions]


def reference_forward(observation, params):
    (w1, b1, w2, b2, w3, b3, wa1, ba1, wa2, ba2, wv1, bv1, wv2, bv2) = params
    h = jnp.maximum(observation @ w1 + b1, 0.0)
    h = jnp.maximum(h @ w2 + b2, 0.0)
    h = h @ w3 + b3
    a = jnp.maximum(h @ wa1 + ba1, 0.0)
    adv = a @ wa2 + ba2
    v = jnp.maximum(h @ wv1 + bv1, 0.0)
    value = v @ wv2 + bv2
    return adv + value - jnp.mean(adv, axis=1, keepdims=True)


if __name__ == "__main__":
    observation_size = 16
    fc_dims = 32
    n_actions = 8

    key = jax.random.PRNGKey(0)
    k_obs, k_params = jax.random.split(key)
    params = make_params(k_params, observation_size, fc_dims, n_actions)
    fused_params = fuse_params(params, n_actions)

    # batch=8   -> single grid step (tile = 8)
    # batch=300 -> pads to 304, tile = 152, grid of 2 (multi-step + padding path)
    for batch in (8, 300):
        obs = jax.random.normal(
            jax.random.fold_in(k_obs, batch),
            (batch, observation_size), dtype=jnp.float32)

        q = dueling_dqn_forward(obs, fused_params, n_actions=n_actions)
        q = jax.block_until_ready(q)

        q_ref = reference_forward(obs, params)
        assert q.shape == (batch, n_actions)
        assert jnp.all(jnp.isfinite(q))
        assert jnp.allclose(q, q_ref, atol=2e-4, rtol=2e-4), (
            float(jnp.max(jnp.abs(q - q_ref))))

    print("KERNEL_OK")
</pallas_src>

<mosaic_0001>
module attributes {stable_mosaic.version = 11 : i64} {
  func.func @dueling_dqn_kernel(%arg0: i32, %arg1: memref<8x16xf32, #tpu.memory_space<vmem>>, %arg2: memref<16x32xf32, #tpu.memory_space<vmem>>, %arg3: memref<1x32xf32, #tpu.memory_space<vmem>>, %arg4: memref<32x32xf32, #tpu.memory_space<vmem>>, %arg5: memref<1x32xf32, #tpu.memory_space<vmem>>, %arg6: memref<32x32xf32, #tpu.memory_space<vmem>>, %arg7: memref<1x32xf32, #tpu.memory_space<vmem>>, %arg8: memref<32x64xf32, #tpu.memory_space<vmem>>, %arg9: memref<1x64xf32, #tpu.memory_space<vmem>>, %arg10: memref<64x128xf32, #tpu.memory_space<vmem>>, %arg11: memref<1x128xf32, #tpu.memory_space<vmem>>, %arg12: memref<8x128xf32, #tpu.memory_space<vmem>>) attributes {dimension_semantics = [#tpu.dimension_semantics<parallel>], iteration_bounds = array<i64: 1>, scalar_prefetch = 0 : i64, scratch_operands = 0 : i64, tpu.core_type = #tpu.core_type<tc>, window_params = [{transform_indices = @transform_0, window_bounds = array<i64: 8, 16>}, {pipeline_mode = #tpu.pipeline_mode<synchronous>, transform_indices = @transform_1, window_bounds = array<i64: 16, 32>}, {pipeline_mode = #tpu.pipeline_mode<synchronous>, transform_indices = @transform_2, window_bounds = array<i64: 1, 32>}, {pipeline_mode = #tpu.pipeline_mode<synchronous>, transform_indices = @transform_3, window_bounds = array<i64: 32, 32>}, {pipeline_mode = #tpu.pipeline_mode<synchronous>, transform_indices = @transform_4, window_bounds = array<i64: 1, 32>}, {pipeline_mode = #tpu.pipeline_mode<synchronous>, transform_indices = @transform_5, window_bounds = array<i64: 32, 32>}, {pipeline_mode = #tpu.pipeline_mode<synchronous>, transform_indices = @transform_6, window_bounds = array<i64: 1, 32>}, {pipeline_mode = #tpu.pipeline_mode<synchronous>, transform_indices = @transform_7, window_bounds = array<i64: 32, 64>}, {pipeline_mode = #tpu.pipeline_mode<synchronous>, transform_indices = @transform_8, window_bounds = array<i64: 1, 64>}, {pipeline_mode = #tpu.pipeline_mode<synchronous>, transform_indices = @transform_9, window_bounds = array<i64: 64, 128>}, {pipeline_mode = #tpu.pipeline_mode<synchronous>, transform_indices = @transform_10, window_bounds = array<i64: 1, 128>}, {transform_indices = @transform_11, window_bounds = array<i64: 8, 128>}]} {
    %c0 = arith.constant 0 : index
    %c0_0 = arith.constant 0 : index
    %0 = vector.load %arg1[%c0, %c0_0] : memref<8x16xf32, #tpu.memory_space<vmem>>, vector<8x16xf32>
    %c0_1 = arith.constant 0 : index
    %c0_2 = arith.constant 0 : index
    %1 = vector.load %arg2[%c0_1, %c0_2] : memref<16x32xf32, #tpu.memory_space<vmem>>, vector<16x32xf32>
    %cst = arith.constant dense<0.000000e+00> : vector<8x32xf32>
    %2 = tpu.matmul %0, %1, %cst {dimension_numbers = #tpu.dot_dimension_numbers<[1], [0], [0], [1], [0, 0, 1, 1], [], []>} : vector<8x16xf32>, vector<16x32xf32>, vector<8x32xf32> -> vector<8x32xf32>
    %c0_3 = arith.constant 0 : index
    %c0_4 = arith.constant 0 : index
    %3 = vector.load %arg3[%c0_3, %c0_4] : memref<1x32xf32, #tpu.memory_space<vmem>>, vector<1x32xf32>
    %4 = vector.broadcast %3 : vector<1x32xf32> to vector<8x32xf32>
    %5 = arith.addf %2, %4 : vector<8x32xf32>
    %cst_5 = arith.constant 0.000000e+00 : f32
    %6 = vector.broadcast %cst_5 : f32 to vector<8x32xf32>
    %7 = arith.maximumf %5, %6 : vector<8x32xf32>
    %c0_6 = arith.constant 0 : index
    %c0_7 = arith.constant 0 : index
    %8 = vector.load %arg4[%c0_6, %c0_7] : memref<32x32xf32, #tpu.memory_space<vmem>>, vector<32x32xf32>
    %cst_8 = arith.constant dense<0.000000e+00> : vector<8x32xf32>
    %9 = tpu.matmul %7, %8, %cst_8 {dimension_numbers = #tpu.dot_dimension_numbers<[1], [0], [0], [1], [0, 0, 1, 1], [], []>} : vector<8x32xf32>, vector<32x32xf32>, vector<8x32xf32> -> vector<8x32xf32>
    %c0_9 = arith.constant 0 : index
    %c0_10 = arith.constant 0 : index
    %10 = vector.load %arg5[%c0_9, %c0_10] : memref<1x32xf32, #tpu.memory_space<vmem>>, vector<1x32xf32>
    %11 = vector.broadcast %10 : vector<1x32xf32> to vector<8x32xf32>
    %12 = arith.addf %9, %11 : vector<8x32xf32>
    %cst_11 = arith.constant 0.000000e+00 : f32
    %13 = vector.broadcast %cst_11 : f32 to vector<8x32xf32>
    %14 = arith.maximumf %12, %13 : vector<8x32xf32>
    %c0_12 = arith.constant 0 : index
    %c0_13 = arith.constant 0 : index
    %15 = vector.load %arg6[%c0_12, %c0_13] : memref<32x32xf32, #tpu.memory_space<vmem>>, vector<32x32xf32>
    %cst_14 = arith.constant dense<0.000000e+00> : vector<8x32xf32>
    %16 = tpu.matmul %14, %15, %cst_14 {dimension_numbers = #tpu.dot_dimension_numbers<[1], [0], [0], [1], [0, 0, 1, 1], [], []>} : vector<8x32xf32>, vector<32x32xf32>, vector<8x32xf32> -> vector<8x32xf32>
    %c0_15 = arith.constant 0 : index
    %c0_16 = arith.constant 0 : index
    %17 = vector.load %arg7[%c0_15, %c0_16] : memref<1x32xf32, #tpu.memory_space<vmem>>, vector<1x32xf32>
    %18 = vector.broadcast %17 : vector<1x32xf32> to vector<8x32xf32>
    %19 = arith.addf %16, %18 : vector<8x32xf32>
    %c0_17 = arith.constant 0 : index
    %c0_18 = arith.constant 0 : index
    %20 = vector.load %arg8[%c0_17, %c0_18] : memref<32x64xf32, #tpu.memory_space<vmem>>, vector<32x64xf32>
    %cst_19 = arith.constant dense<0.000000e+00> : vector<8x64xf32>
    %21 = tpu.matmul %19, %20, %cst_19 {dimension_numbers = #tpu.dot_dimension_numbers<[1], [0], [0], [1], [0, 0, 1, 1], [], []>} : vector<8x32xf32>, vector<32x64xf32>, vector<8x64xf32> -> vector<8x64xf32>
    %c0_20 = arith.constant 0 : index
    %c0_21 = arith.constant 0 : index
    %22 = vector.load %arg9[%c0_20, %c0_21] : memref<1x64xf32, #tpu.memory_space<vmem>>, vector<1x64xf32>
    %23 = vector.broadcast %22 : vector<1x64xf32> to vector<8x64xf32>
    %24 = arith.addf %21, %23 : vector<8x64xf32>
    %cst_22 = arith.constant 0.000000e+00 : f32
    %25 = vector.broadcast %cst_22 : f32 to vector<8x64xf32>
    %26 = arith.maximumf %24, %25 : vector<8x64xf32>
    %c0_23 = arith.constant 0 : index
    %c0_24 = arith.constant 0 : index
    %27 = vector.load %arg10[%c0_23, %c0_24] : memref<64x128xf32, #tpu.memory_space<vmem>>, vector<64x128xf32>
    %cst_25 = arith.constant dense<0.000000e+00> : vector<8x128xf32>
    %28 = tpu.matmul %26, %27, %cst_25 {dimension_numbers = #tpu.dot_dimension_numbers<[1], [0], [0], [1], [0, 0, 1, 1], [], []>} : vector<8x64xf32>, vector<64x128xf32>, vector<8x128xf32> -> vector<8x128xf32>
    %c0_26 = arith.constant 0 : index
    %c0_27 = arith.constant 0 : index
    %29 = vector.load %arg11[%c0_26, %c0_27] : memref<1x128xf32, #tpu.memory_space<vmem>>, vector<1x128xf32>
    %30 = vector.broadcast %29 : vector<1x128xf32> to vector<8x128xf32>
    %31 = arith.addf %28, %30 : vector<8x128xf32>
    %c0_28 = arith.constant 0 : index
    %c0_29 = arith.constant 0 : index
    %32 = vector.load %arg12[%c0_28, %c0_29] : memref<8x128xf32, #tpu.memory_space<vmem>>, vector<8x128xf32>
    tpu.vector_store %arg12[%c0_28, %c0_29], %31 {strides = array<i32>} : memref<8x128xf32, #tpu.memory_space<vmem>>, vector<8x128xf32>,
    return
  }
  func.func @transform_0(%arg0: i32) -> (i32, i32) {
    %c0_i32 = arith.constant 0 : i32
    %c0_i32_0 = arith.constant 0 : i32
    return %arg0, %c0_i32 : i32, i32
  }
  func.func @transform_1(%arg0: i32) -> (i32, i32) {
    %c0_i32 = arith.constant 0 : i32
    %c0_i32_0 = arith.constant 0 : i32
    %c0_i32_1 = arith.constant 0 : i32
    return %c0_i32, %c0_i32_0 : i32, i32
  }
  func.func @transform_2(%arg0: i32) -> (i32, i32) {
    %c0_i32 = arith.constant 0 : i32
    %c0_i32_0 = arith.constant 0 : i32
    %c0_i32_1 = arith.constant 0 : i32
    return %c0_i32, %c0_i32_0 : i32, i32
  }
  func.func @transform_3(%arg0: i32) -> (i32, i32) {
    %c0_i32 = arith.constant 0 : i32
    %c0_i32_0 = arith.constant 0 : i32
    %c0_i32_1 = arith.constant 0 : i32
    return %c0_i32, %c0_i32_0 : i32, i32
  }
  func.func @transform_4(%arg0: i32) -> (i32, i32) {
    %c0_i32 = arith.constant 0 : i32
    %c0_i32_0 = arith.constant 0 : i32
    %c0_i32_1 = arith.constant 0 : i32
    return %c0_i32, %c0_i32_0 : i32, i32
  }
  func.func @transform_5(%arg0: i32) -> (i32, i32) {
    %c0_i32 = arith.constant 0 : i32
    %c0_i32_0 = arith.constant 0 : i32
    %c0_i32_1 = arith.constant 0 : i32
    return %c0_i32, %c0_i32_0 : i32, i32
  }
  func.func @transform_6(%arg0: i32) -> (i32, i32) {
    %c0_i32 = arith.constant 0 : i32
    %c0_i32_0 = arith.constant 0 : i32
    %c0_i32_1 = arith.constant 0 : i32
    return %c0_i32, %c0_i32_0 : i32, i32
  }
  func.func @transform_7(%arg0: i32) -> (i32, i32) {
    %c0_i32 = arith.constant 0 : i32
    %c0_i32_0 = arith.constant 0 : i32
    %c0_i32_1 = arith.constant 0 : i32
    return %c0_i32, %c0_i32_0 : i32, i32
  }
  func.func @transform_8(%arg0: i32) -> (i32, i32) {
    %c0_i32 = arith.constant 0 : i32
    %c0_i32_0 = arith.constant 0 : i32
    %c0_i32_1 = arith.constant 0 : i32
    return %c0_i32, %c0_i32_0 : i32, i32
  }
  func.func @transform_9(%arg0: i32) -> (i32, i32) {
    %c0_i32 = arith.constant 0 : i32
    %c0_i32_0 = arith.constant 0 : i32
    %c0_i32_1 = arith.constant 0 : i32
    return %c0_i32, %c0_i32_0 : i32, i32
  }
  func.func @transform_10(%arg0: i32) -> (i32, i32) {
    %c0_i32 = arith.constant 0 : i32
    %c0_i32_0 = arith.constant 0 : i32
    %c0_i32_1 = arith.constant 0 : i32
    return %c0_i32, %c0_i32_0 : i32, i32
  }
  func.func @transform_11(%arg0: i32) -> (i32, i32) {
    %c0_i32 = arith.constant 0 : i32
    %c0_i32_0 = arith.constant 0 : i32
    return %arg0, %c0_i32 : i32, i32
  }
}

</mosaic_0001>

<bundles_post_ra>
// kernel: dueling_dqn_forward.1
= control target key start
LH: loop header
LB: loop body
LE: loop exit
PB: predicated region body
PF: predicated region fallthrough
CT: control target
= control target key end

     0   :  { %16 = vsyncpa [#allocation3], 0  ;;  %s1077_s0 = inlined_call_operand.hbm [shape: f32[8,16], index: 0, kind: input, shape index: {}]   ;;  %s1078_s1 = inlined_call_operand.hbm [shape: f32[16,32], index: 1, kind: input, shape index: {}]   ;;  %s1079_s2 = inlined_call_operand.vmem [shape: f32[1,32], index: 2, kind: input, shape index: {}]   ;;  %s1080_s3 = inlined_call_operand.hbm [shape: f32[32,32], index: 3, kind: input, shape index: {}]   ;;  %s1081_s4 = inlined_call_operand.vmem [shape: f32[1,32], index: 4, kind: input, shape index: {}]   ;;  %s1082_s5 = inlined_call_operand.hbm [shape: f32[32,32], index: 5, kind: input, shape index: {}]   ;;  %s1083_s6 = inlined_call_operand.vmem [shape: f32[1,32], index: 6, kind: input, shape index: {}]   ;;  %s1084_s7 = inlined_call_operand.hbm [shape: f32[32,64], index: 7, kind: input, shape index: {}]   ;;  %s1085_s8 = inlined_call_operand.vmem [shape: f32[1,64], index: 8, kind: input, shape index: {}]   ;;  %s1086_s9 = inlined_call_operand.hbm [shape: f32[64,128], index: 9, kind: input, shape index: {}]   ;;  %s1087_s10 = inlined_call_operand.vmem [shape: f32[1,128], index: 10, kind: input, shape index: {}]   ;;  %s1088_s11 = inlined_call_operand.hbm [shape: f32[8,128], index: 11, kind: output, shape index: {}]  }
   0x1   :  { %17 = vsyncpa [#allocation6], 0 }
   0x2   :  { %18 = vsyncpa [#allocation9], 0 }
   0x3   :  { %19 = vsyncpa [#allocation12], 0 }
   0x4   :  { %20 = vsyncpa [#allocation4], 0  ;;  %s872_s17 = smov [#allocation5]   ;;  %s708_s21 = scalar_lea.hbm %s1078_s1, 256 }
   0x5   :  { %s36_s18 = sshll.u32 %s872_s17, 4  ;;  %p709_p0 = scmp.ne.s32.totalorder %s1078_s1, %s708_s21  ;;  %s37_s18 = int_to_ptr.vmem [resolvable:$true] %s36_s18 }
   0x6   :  { %p712_p1 = scmp.lt.u32.totalorder %s708_s21, %s1078_s1 }
   0x8   :  { %p714_p2 = pnand %p712_p1, %p709_p0 }
   0xa   :  { %717 = shalt.err (!%p714_p2)
}
   0xb   :  { %s718_s26 = scalar_lea.vmem %s37_s18, 256  ;;  %p723_p4 = scmp.lt.s32.totalorder %s37_s18, %s37_s18 }
   0xc   :  { %p719_p3 = scmp.ne.s32.totalorder %s37_s18, %s718_s26  ;;  %p724_p5 = scmp.lt.s32.totalorder %s718_s26, %s718_s26 }
   0xe   :  { %p725_p6 = por %p724_p5, %p723_p4 }
  0x10   :  { %p726_p7 = pnand %p725_p6, %p719_p3 }
  0x12   :  { %729 = shalt.err (!%p726_p7)
}
  0x13   :  { %s873_s27 = smov 128   ;;  %s874_s28 = smov 8  }
  0x14   :  { %42 = dma.hbm_to_vmem [thread:$0]  %s1078_s1, 256, %s37_s18, [#allocation6], %s873_s27, %s873_s27, %s874_s28  }
  0x15   :  { %s875_s12 = smov [#allocation8]   ;;  %s876_s14 = smov [#allocation2]  }
  0x16   :  { %s64_s13 = sshll.u32 %s875_s12, 4  ;;  %s27_s15 = sshll.u32 %s876_s14, 4  ;;  %s65_s13 = int_to_ptr.vmem [resolvable:$true] %s64_s13  ;;  %s28_s15 = int_to_ptr.vmem [resolvable:$true] %s27_s15 }
  0x17   :  { %s730_s19 = scalar_lea.hbm %s1082_s5, 512 }
  0x18   :  { %p731_p8 = scmp.ne.s32.totalorder %s1082_s5, %s730_s19  ;;  %p734_p9 = scmp.lt.u32.totalorder %s730_s19, %s1082_s5 }
  0x1a   :  { %p736_p10 = pnand %p734_p9, %p731_p8 }
  0x1c   :  { %739 = shalt.err (!%p736_p10)
}
  0x1d   :  { %s740_s1 = scalar_lea.vmem %s65_s13, 512  ;;  %p745_p12 = scmp.lt.s32.totalorder %s65_s13, %s65_s13 }
  0x1e   :  { %p741_p11 = scmp.ne.s32.totalorder %s65_s13, %s740_s1  ;;  %p746_p13 = scmp.lt.s32.totalorder %s740_s1, %s740_s1 }
  0x20   :  { %p747_p0 = por %p746_p13, %p745_p12 }
  0x22   :  { %p748_p1 = pnand %p747_p0, %p741_p11 }
  0x24   :  { %751 = shalt.err (!%p748_p1)
}
  0x25   :  { %70 = dma.hbm_to_vmem [thread:$0]  %s1082_s5, 512, %s65_s13, [#allocation9], %s873_s27, %s873_s27, %s874_s28  }
  0x26   :  { %s752_s29 = scalar_lea.hbm %s1077_s0, 128 }
  0x27   :  { %p753_p2 = scmp.ne.s32.totalorder %s1077_s0, %s752_s29  ;;  %p756_p3 = scmp.lt.u32.totalorder %s752_s29, %s1077_s0 }
  0x29   :  { %p758_p4 = pnand %p756_p3, %p753_p2 }
  0x2b   :  { %761 = shalt.err (!%p758_p4)
}
  0x2c   :  { %s762_s17 = scalar_lea.vmem %s28_s15, 128  ;;  %p767_p6 = scmp.lt.s32.totalorder %s28_s15, %s28_s15 }
  0x2d   :  { %p763_p5 = scmp.ne.s32.totalorder %s28_s15, %s762_s17  ;;  %p768_p7 = scmp.lt.s32.totalorder %s762_s17, %s762_s17 }
  0x2f   :  { %p769_p8 = por %p768_p7, %p767_p6 }
  0x31   :  { %p770_p9 = pnand %p769_p8, %p763_p5 }
  0x33   :  { %773 = shalt.err (!%p770_p9)
}
  0x34   :  { %30 = dma.hbm_to_vmem [thread:$0]  %s1077_s0, 128, %s28_s15, [#allocation3]  }
  0x35   :  { %s877_s19 = smov [#allocation7]   ;;  %s878_s21 = smov [#allocation10]  }
  0x36   :  { %s50_s20 = sshll.u32 %s877_s19, 4  ;;  %s78_s22 = sshll.u32 %s878_s21, 4  ;;  %s51_s20 = int_to_ptr.vmem [resolvable:$true] %s50_s20  ;;  %s79_s22 = int_to_ptr.vmem [resolvable:$true] %s78_s22 }
  0x37   :  { %s774_s18 = scalar_lea.hbm %s1080_s3, 512 }
  0x38   :  { %p775_p10 = scmp.ne.s32.totalorder %s1080_s3, %s774_s18  ;;  %p778_p11 = scmp.lt.u32.totalorder %s774_s18, %s1080_s3 }
  0x3a   :  { %p780_p12 = pnand %p778_p11, %p775_p10 }
  0x3c   :  { %783 = shalt.err (!%p780_p12)
}
  0x3d   :  { %s784_s0 = scalar_lea.vmem %s51_s20, 512  ;;  %p789_p0 = scmp.lt.s32.totalorder %s51_s20, %s51_s20 }
  0x3e   :  { %p785_p13 = scmp.ne.s32.totalorder %s51_s20, %s784_s0  ;;  %p790_p1 = scmp.lt.s32.totalorder %s784_s0, %s784_s0 }
  0x40   :  { %p791_p2 = por %p790_p1, %p789_p0 }
  0x42   :  { %p792_p3 = pnand %p791_p2, %p785_p13 }
  0x44   :  { %795 = shalt.err (!%p792_p3)
}
  0x45   :  { %56 = dma.hbm_to_vmem [thread:$0]  %s1080_s3, 512, %s51_s20, [#allocation6], %s873_s27, %s873_s27, %s874_s28  }
  0x46   :  { %s796_s16 = scalar_lea.hbm %s1084_s7, 512 }
  0x47   :  { %p797_p4 = scmp.ne.s32.totalorder %s1084_s7, %s796_s16  ;;  %p800_p5 = scmp.lt.u32.totalorder %s796_s16, %s1084_s7 }
  0x49   :  { %p802_p6 = pnand %p800_p5, %p797_p4 }
  0x4b   :  { %805 = shalt.err (!%p802_p6)
}
  0x4c   :  { %s806_s21 = scalar_lea.vmem %s79_s22, 512  ;;  %p811_p8 = scmp.lt.s32.totalorder %s79_s22, %s79_s22 }
  0x4d   :  { %p807_p7 = scmp.ne.s32.totalorder %s79_s22, %s806_s21  ;;  %p812_p9 = scmp.lt.s32.totalorder %s806_s21, %s806_s21 }
  0x4f   :  { %p813_p10 = por %p812_p9, %p811_p8 }
  0x51   :  { %p814_p11 = pnand %p813_p10, %p807_p7 }
  0x53   :  { %817 = shalt.err (!%p814_p11)
}
  0x54   :  { %84 = dma.hbm_to_vmem [thread:$0]  %s1084_s7, 512, %s79_s22, [#allocation9], %s873_s27, %s873_s27, %s874_s28  }
  0x55   :  { %s879_s23 = smov [#allocation11]   ;;  %s818_s25 = scalar_lea.hbm %s1086_s9, 1024 }
  0x56   :  { %s92_s1 = sshll.u32 %s879_s23, 4  ;;  %p819_p12 = scmp.ne.s32.totalorder %s1086_s9, %s818_s25  ;;  %s93_s1 = int_to_ptr.vmem [resolvable:$true] %s92_s1 }
  0x57   :  { %p822_p13 = scmp.lt.u32.totalorder %s818_s25, %s1086_s9 }
  0x59   :  { %p824_p0 = pnand %p822_p13, %p819_p12 }
  0x5b   :  { %827 = shalt.err (!%p824_p0)
}
  0x5c   :  { %s828_s30 = scalar_lea.vmem %s93_s1, 1024  ;;  %p833_p2 = scmp.lt.s32.totalorder %s93_s1, %s93_s1 }
  0x5d   :  { %p829_p1 = scmp.ne.s32.totalorder %s93_s1, %s828_s30  ;;  %p834_p3 = scmp.lt.s32.totalorder %s828_s30, %s828_s30 }
  0x5f   :  { %p835_p4 = por %p834_p3, %p833_p2 }
  0x61   :  { %p836_p5 = pnand %p835_p4, %p829_p1 }
  0x63   :  { %839 = shalt.err (!%p836_p5)
}
  0x64   :  { %98 = dma.hbm_to_vmem [thread:$0]  %s1086_s9, 1024, %s93_s1, [#allocation12], %s873_s27, %s873_s27, %s874_s28  }
  0x65   :  { %862 = dma.done.wait [#allocation3], 128  }
  0x66   :  { %863 = vsyncadd [#allocation3], 4294967168 }
  0x67   :  { %864 = dma.done.wait [#allocation6], 768  }
  0x68   :  { %865 = vsyncadd [#allocation6], 4294966528 }
  0x69   :  { %866 = dma.done.wait [#allocation9], 1024  }
  0x6a   :  { %867 = vsyncadd [#allocation9], 4294966272 }
  0x6b   :  { %868 = dma.done.wait [#allocation12], 1024  }
  0x6c   :  { %869 = vsyncadd [#allocation12], 4294966272  ;;  %v880_v0 = vmov 0.0|0.0   ;;  %vm881_vm0 = vmmov 0   ;;  %v882_v1 = vmov 0.0   ;;  %v120_v2 = vld [vmem:[#allocation5] sm:$0xff] }
  0x6d   :  { %663 = vmatprep.subr.bf16.mxu1 %v880_v0  ;;  %608 = vmatprep.mubr.msk.f32.mxu1 %vm881_vm0, %v882_v1  ;;  %v121_v3 = vld [vmem:[#allocation5 + $0x8] sm:$0xff]  ;;  %v204_v5 = vld [vmem:[#allocation7] sm:$0xff]  ;;  %v205_v6 = vld [vmem:[#allocation7 + $0x8] sm:$0xff]  ;;  %vm129_vm1 = vcmask 130048   ;;  %vm215_vm2 = vcmask 261120   ;;  %vm474_vm3 = vcmask 523264  }
  0x6e   :  { %672 = vmatprep.subr.bf16.mxu0 %v880_v0  ;;  %630 = vmatprep.mubr.msk.f32.mxu0 %vm881_vm0, %v882_v1  ;;  %v664_v4 = vpack.c.bf16 %v121_v3, %v120_v2  ;;  %v119_v7 = vld [vmem:[#allocation2] sm:$0xff]  ;;  %v667_v8 = vpack.c.bf16 %v205_v6, %v204_v5  ;;  %v206_v9 = vld [vmem:[#allocation7 + $0x10] sm:$0xff]  ;;  %v207_v10 = vld [vmem:[#allocation7 + $0x18] sm:$0xff]  ;;  %s883_s5 = smov [#allocation13]  }
  0x6f   :  { %v670_v11 = vpack.c.bf16 %v207_v10, %v206_v9  ;;  %v290_v12 = vld [vmem:[#allocation8] sm:$0xff]  ;;  %v291_v13 = vld [vmem:[#allocation8 + $0x8] sm:$0xff]  ;;  %v292_v20 = vld [vmem:[#allocation8 + $0x10] sm:$0xff]  ;;  %s555_s13 = sshll.u32 %s883_s5, 4  ;;  %s556_s13 = int_to_ptr.vmem [resolvable:$true] %s555_s13 }
  0x70   :  { %665 = vmatpush3.bf16.msra.mxu1 %v664_v4  ;;  %v673_v14 = vpack.c.bf16 %v291_v13, %v290_v12  ;;  %v567_v15 = vld [vmem:[%s1079_s2] ss:$0 sm:$0xff]  ;;  %v293_v21 = vld [vmem:[#allocation8 + $0x18] sm:$0xff]  ;;  %v374_v23 = vld [vmem:[#allocation10] sm:$0xff]  ;;  %s840_s19 = scalar_lea.vmem %s556_s13, 128  ;;  %p845_p7 = scmp.lt.s32.totalorder %s556_s13, %s556_s13 }
  0x71   :  { %666 = vmatprep.subr.bf16.mxu1 %v880_v0  ;;  %v676_v22 = vpack.c.bf16 %v293_v21, %v292_v20  ;;  %v375_v24 = vld [vmem:[#allocation10 + $0x8] sm:$0xff]  ;;  %v376_v31 = vld [vmem:[#allocation10 + $0x10] sm:$0xff]  ;;  %v377_v32 = vld [vmem:[#allocation10 + $0x18] sm:$0xff]  ;;  %p841_p6 = scmp.ne.s32.totalorder %s556_s13, %s840_s19  ;;  %p846_p8 = scmp.lt.s32.totalorder %s840_s19, %s840_s19 }
  0x72   :  { %674 = vmatpush3.bf16.msra.mxu0 %v673_v14  ;;  %v679_v25 = vpack.c.bf16 %v375_v24, %v374_v23  ;;  %v569_v26 = vld [vmem:[%s1081_s4] ss:$0 sm:$0xff]  ;;  %v682_v33 = vpack.c.bf16 %v377_v32, %v376_v31  ;;  %v459_v34 = vld [vmem:[#allocation11] sm:$0xff]  ;;  %v461_v36 = vld [vmem:[#allocation11 + $0x10] sm:$0xff] }
  0x73   :  { %609 = vmatmul.mubr.msk.f32.vlgmr.msra.gmra.mrb[0].mxu1 %vm129_vm1, %v119_v7  ;;  %675 = vmatprep.subr.bf16.mxu0 %v880_v0  ;;  %v460_v35 = vld [vmem:[#allocation11 + $0x8] sm:$0xff]  ;;  %v462_v38 = vld [vmem:[#allocation11 + $0x18] sm:$0xff]  ;;  %v463_v40 = vld [vmem:[#allocation11 + $0x20] sm:$0xff]  ;;  %p847_p9 = por %p846_p8, %p845_p7 }
  0x74   :  { %668 = vmatpush3.bf16.msra.mxu1 %v667_v8  ;;  %619 = vmatprep.mubr.msk.f32.mxu1 %vm881_vm0, %v882_v1  ;;  %v685_v37 = vpack.c.bf16 %v460_v35, %v459_v34  ;;  %v688_v39 = vpack.c.bf16 %v462_v38, %v461_v36  ;;  %v464_v41 = vld [vmem:[#allocation11 + $0x28] sm:$0xff]  ;;  %v465_v47 = vld [vmem:[#allocation11 + $0x30] sm:$0xff]  ;;  %v466_v48 = vld [vmem:[#allocation11 + $0x38] sm:$0xff] }
  0x75   :  { %669 = vmatprep.subr.bf16.mxu1 %v880_v0  ;;  %v691_v42 = vpack.c.bf16 %v464_v41, %v463_v40  ;;  %v571_v43 = vld [vmem:[%s1083_s6] ss:$0 sm:$0xff]  ;;  %v694_v49 = vpack.c.bf16 %v466_v48, %v465_v47  ;;  %p848_p10 = pnand %p847_p9, %p841_p6 }
  0x76   :  { %677 = vmatpush3.bf16.msra.mxu0 %v676_v22  ;;  %v573_v50 = vld [vmem:[%s1085_s8] ss:$0 sm:$0xff] }
  0x77   :  { %684 = vmatprep.subr.bf16.mxu0 %v880_v0  ;;  %v575_v55 = vld [vmem:[%s1087_s10] ss:$0 sm:$0xff] }
  0x78   :  { %671 = vmatpush3.bf16.msra.mxu1 %v670_v11 }
  0x79   :  { %678 = vmatprep.subr.bf16.mxu1 %v880_v0 }
 0x146   :  { %v199_v16 = vpop.f32.mrb[0].mxu1 }
 0x147   :  { %v200_v17 = vadd.f32 %v567_v15, %v199_v16  ;;  %v610_v18 = vpop.f32.mrb[1].mxu1 }
 0x149   :  { %v203_v19 = vmax.f32 %v200_v17, 0.0 }
 0x14b   :  { %620 = vmatmul.mubr.msk.f32.vlgmr.msra.gmra.mrb[2].mxu1 %vm215_vm2, %v203_v19 }
 0x14c   :  { %641 = vmatprep.mubr.msk.f32.mxu1 %vm881_vm0, %v882_v1  ;;  %680 = vmatpush3.bf16.msra.mxu1 %v679_v25 }
 0x14d   :  { %681 = vmatprep.subr.bf16.mxu1 %v880_v0 }
 0x150   :  { %683 = vmatpush3.bf16.msra.mxu1 %v682_v33 }
 0x21e   :  { %v285_v27 = vpop.f32.mrb[2].mxu1 }
 0x21f   :  { %v286_v28 = vadd.f32 %v569_v26, %v285_v27  ;;  %v621_v29 = vpop.f32.mrb[3].mxu1 }
 0x221   :  { %v289_v30 = vmax.f32 %v286_v28, 0.0 }
 0x223   :  { %631 = vmatmul.mubr.msk.f32.vlgmr.msra.gmra.mrb[0].mxu0 %vm215_vm2, %v289_v30 }
 0x224   :  { %660 = vmatprep.mubr.msk.f32.mxu0 %vm881_vm0, %v882_v1  ;;  %686 = vmatpush3.bf16.msra.mxu0 %v685_v37 }
 0x225   :  { %687 = vmatprep.subr.bf16.mxu0 %v880_v0 }
 0x228   :  { %689 = vmatpush3.bf16.msra.mxu0 %v688_v39 }
 0x229   :  { %690 = vmatprep.subr.bf16.mxu0 %v880_v0 }
 0x22c   :  { %692 = vmatpush3.bf16.msra.mxu0 %v691_v42 }
 0x22d   :  { %693 = vmatprep.subr.bf16.mxu0 %v880_v0 }
 0x230   :  { %695 = vmatpush3.bf16.msra.mxu0 %v694_v49 }
 0x2f6   :  { %v370_v44 = vpop.f32.mrb[0].mxu0 }
 0x2f7   :  { %v371_v45 = vadd.f32 %v571_v43, %v370_v44  ;;  %v632_v46 = vpop.f32.mrb[1].mxu0 }
 0x2f9   :  { %642 = vmatmul.mubr.msk.f32.vlgmr.msra.gmra.mrb[4].mxu1 %vm215_vm2, %v371_v45 }
 0x3cc   :  { %v454_v51 = vpop.f32.mrb[4].mxu1 }
 0x3cd   :  { %v455_v52 = vadd.f32 %v573_v50, %v454_v51  ;;  %v643_v53 = vpop.f32.mrb[5].mxu1 }
 0x3cf   :  { %v458_v54 = vmax.f32 %v455_v52, 0.0 }
 0x3d1   :  { %661 = vmatmul.mubr.msk.f32.vlgmr.msra.gmra.mrb[2].mxu0 %vm474_vm3, %v458_v54 }
 0x4a4   :  { %v544_v56 = vpop.f32.mrb[2].mxu0 }
 0x4a5   :  { %v545_v57 = vadd.f32 %v575_v55, %v544_v56  ;;  %v662_v58 = vpop.f32.mrb[3].mxu0 }
 0x4a7   :  { %548 = vst [vmem:[#allocation13] sm:$0xff] %v545_v57 }
 0x4a8   :  { %851 = shalt.err (!%p848_p10)
}
 0x4a9   :  { %s852_s3 = scalar_lea.hbm %s1088_s11, 128 }
 0x4aa   :  { %p853_p11 = scmp.ne.s32.totalorder %s1088_s11, %s852_s3  ;;  %p856_p12 = scmp.lt.u32.totalorder %s852_s3, %s1088_s11 }
 0x4ac   :  { %p858_p13 = pnand %p856_p12, %p853_p11 }
 0x4ae   :  { %861 = shalt.err (!%p858_p13)
}
 0x4af   :  { %558 = dma.vmem_to_hbm [thread:$0]  %s556_s13, 128, %s1088_s11, [#allocation4]  }
 0x4b0   :  { %870 = dma.done.wait [#allocation4], 128  }
 0x4b1   :  { %871 = vsyncadd [#allocation4], 4294967168 }
 0x4b2   :  { %562 = vsyncpa [#allocation3], 1 }
 0x4b3   :  { %563 = vsyncpa [#allocation6], 1 }
 0x4b4   :  { %564 = vsyncpa [#allocation9], 1 }
 0x4b5   :  { %565 = vsyncpa [#allocation12], 1 }
 0x4b6   :  { %566 = vsyncpa [#allocation4], 1 }

</bundles_post_ra>
